<compile_context>
chip_gen: v6e
topology: v6e:2x2x1
jax: 0.10.0
libtpu: 0.0.40
codegen_flags: <defaults>
</compile_context>

<pallas_src>
import jax
import jax.numpy as jnp
from jax.experimental import pallas as pl
from jax.experimental.pallas import tpu as pltpu


def _round_up(x, m):
    return ((x + m - 1) // m) * m


def _choose_tiles(nc, hw, dtype_bytes):
    """Pick (row_tile, col_tile) that fit a cross-generation VMEM budget."""
    sub = max(8, 32 // dtype_bytes)           # sublane packing multiple (f32:8, bf16:16)
    tile_budget = 16 * 1024 * 1024            # per input buffer (double-buffered -> 32 MiB)
    target_rows = 512

    rows_fit_full_hw = tile_budget // max(1, hw * dtype_bytes)
    if rows_fit_full_hw >= 256:
        # Whole spatial extent in one block; single reduction step per row tile.
        col_tile = hw
        row_tile = min(target_rows, (rows_fit_full_hw // sub) * sub)
    else:
        # Spatial extent too large for a big row tile: split the reduction axis
        # into lane-aligned chunks so the row tile can stay large.
        row_tile = 256
        cols_fit = tile_budget // (row_tile * dtype_bytes)
        col_tile = max(128, (cols_fit // 128) * 128)
        col_tile = min(col_tile, _round_up(hw, 128))

    # Never use more rows than the (sublane-padded) problem has.
    row_tile = max(sub, min(row_tile, _round_up(nc, sub)))
    # Keep >= ~8 row tiles when possible so the "parallel" axis can shard
    # across v7x's 2 TensorCores (no effect on single-TC v5e/v6e).
    while row_tile > sub and pl.cdiv(nc, row_tile) < 8:
        row_tile = max(sub, _round_up(row_tile // 2, sub))
    return row_tile, col_tile


def _make_gap_kernel(hw, col_tile):
    inv_hw = 1.0 / float(hw)
    ragged_cols = (hw % col_tile) != 0

    def kernel(x_ref, o_ref, acc_ref):
        # x_ref: (row_tile, col_tile) VMEM tile; o_ref: (row_tile, 1);
        # acc_ref: (row_tile, 1) f32 scratch, persistent across the k axis.
        k = pl.program_id(1)

        @pl.when(k == 0)
        def _init():
            acc_ref[...] = jnp.zeros_like(acc_ref)

        x = x_ref[...].astype(jnp.float32)
        if ragged_cols:
            # Mask out-of-range spatial columns in the last (partial) k block.
            col = k * col_tile + jax.lax.broadcasted_iota(jnp.int32, x.shape, 1)
            x = jnp.where(col < hw, x, 0.0)
        acc_ref[...] += jnp.sum(x, axis=-1, keepdims=True)

        @pl.when(k == pl.num_programs(1) - 1)
        def _finalize():
            o_ref[...] = (acc_ref[...] * inv_hw).astype(o_ref.dtype)

    return kernel


def global_avg_pool2d(x, *, row_tile=None, col_tile=None):
    """Equivalent of F.avg_pool2d(x, kernel_size=x.shape[2:]) for NCHW input."""
    n, c, h, w = x.shape
    nc, hw = n * c, h * w
    x2d = x.reshape(nc, hw)
    dtype_bytes = jnp.dtype(x.dtype).itemsize

    auto_rt, auto_ct = _choose_tiles(nc, hw, dtype_bytes)
    if row_tile is None:
        row_tile = auto_rt
    if col_tile is None:
        col_tile = auto_ct

    grid = (pl.cdiv(nc, row_tile), pl.cdiv(hw, col_tile))

    out2d = pl.pallas_call(
        _make_gap_kernel(hw, col_tile),
        out_shape=jax.ShapeDtypeStruct((nc, 1), x.dtype),
        grid=grid,
        in_specs=[pl.BlockSpec((row_tile, col_tile), lambda i, k: (i, k))],
        out_specs=pl.BlockSpec((row_tile, 1), lambda i, k: (i, 0)),
        scratch_shapes=[pltpu.VMEM((row_tile, 1), jnp.float32)],
        compiler_params=pltpu.CompilerParams(
            dimension_semantics=("parallel", "arbitrary"),
            # 2 x 16 MiB input double-buffer + scratch; < 64 MiB v7x physical,
            # and above v5e's 16 MiB default scoped limit.
            vmem_limit_bytes=48 * 1024 * 1024,
        ),
    )(x2d)

    return out2d.reshape(n, c, 1, 1)


if __name__ == "__main__":
    key = jax.random.PRNGKey(0)

    # Small NCHW input consistent with the module's forward.
    x = jax.random.normal(key, (2, 4, 16, 16), dtype=jnp.float32)
    out = jax.block_until_ready(global_avg_pool2d(x))
    ref = jnp.mean(x, axis=(2, 3), keepdims=True)
    assert out.shape == (2, 4, 1, 1), out.shape
    assert jnp.allclose(out, ref, atol=1e-5, rtol=1e-5)

    # Also exercise the ragged-row / split-and-masked spatial path at small scale.
    x2 = jax.random.normal(jax.random.PRNGKey(1), (3, 5, 12, 12), dtype=jnp.float32)
    out2 = jax.block_until_ready(global_avg_pool2d(x2, row_tile=8, col_tile=128))
    ref2 = jnp.mean(x2, axis=(2, 3), keepdims=True)
    assert out2.shape == (3, 5, 1, 1), out2.shape
    assert jnp.allclose(out2, ref2, atol=1e-5, rtol=1e-5)

    print("KERNEL_OK")
</pallas_src>

<mosaic_0001>
module attributes {stable_mosaic.version = 11 : i64} {
  func.func @kernel(%arg0: i32, %arg1: i32, %arg2: memref<8x256xf32, #tpu.memory_space<vmem>>, %arg3: memref<8x1xf32, #tpu.memory_space<vmem>>, %arg4: memref<8x1xf32, #tpu.memory_space<vmem>>) attributes {dimension_semantics = [#tpu.dimension_semantics<parallel>, #tpu.dimension_semantics<arbitrary>], iteration_bounds = array<i64: 1, 1>, scalar_prefetch = 0 : i64, scratch_operands = 1 : i64, tpu.core_type = #tpu.core_type<tc>, window_params = [{transform_indices = @transform_0, window_bounds = array<i64: 8, 256>}, {transform_indices = @transform_1, window_bounds = array<i64: 8, 1>}]} {
    %c0_i32 = arith.constant 0 : i32
    %0 = arith.cmpi eq, %arg1, %c0_i32 : i32
    %1 = arith.extui %0 : i1 to i32
    %c0_i32_0 = arith.constant 0 : i32
    %2 = arith.cmpi ne, %1, %c0_i32_0 : i32
    scf.if %2 {
      %cst_8 = arith.constant 0.000000e+00 : f32
      %12 = vector.broadcast %cst_8 : f32 to vector<8x1xf32>
      %c0_9 = arith.constant 0 : index
      %c0_10 = arith.constant 0 : index
      %13 = vector.load %arg4[%c0_9, %c0_10] : memref<8x1xf32, #tpu.memory_space<vmem>>, vector<8x1xf32>
      tpu.vector_store %arg4[%c0_9, %c0_10], %12 {strides = array<i32>} : memref<8x1xf32, #tpu.memory_space<vmem>>, vector<8x1xf32>,
    } else {
    }
    %c0 = arith.constant 0 : index
    %c0_1 = arith.constant 0 : index
    %3 = vector.load %arg2[%c0, %c0_1] : memref<8x256xf32, #tpu.memory_space<vmem>>, vector<8x256xf32>
    %c0_2 = arith.constant 0 : index
    %c0_3 = arith.constant 0 : index
    %4 = vector.load %arg4[%c0_2, %c0_3] : memref<8x1xf32, #tpu.memory_space<vmem>>, vector<8x1xf32>
    %cst = arith.constant dense<0.000000e+00> : vector<8xf32>
    %5 = vector.multi_reduction <add>, %3, %cst [1] : vector<8x256xf32> to vector<8xf32>
    %6 = vector.shape_cast %5 : vector<8xf32> to vector<8x1xf32>
    %7 = arith.addf %4, %6 : vector<8x1xf32>
    %c0_4 = arith.constant 0 : index
    %c0_5 = arith.constant 0 : index
    %8 = vector.load %arg4[%c0_4, %c0_5] : memref<8x1xf32, #tpu.memory_space<vmem>>, vector<8x1xf32>
    tpu.vector_store %arg4[%c0_4, %c0_5], %7 {strides = array<i32>} : memref<8x1xf32, #tpu.memory_space<vmem>>, vector<8x1xf32>,
    %c0_i32_6 = arith.constant 0 : i32
    %9 = arith.cmpi eq, %arg1, %c0_i32_6 : i32
    %10 = arith.extui %9 : i1 to i32
    %c0_i32_7 = arith.constant 0 : i32
    %11 = arith.cmpi ne, %10, %c0_i32_7 : i32
    scf.if %11 {
      %c0_8 = arith.constant 0 : index
      %c0_9 = arith.constant 0 : index
      %12 = vector.load %arg4[%c0_8, %c0_9] : memref<8x1xf32, #tpu.memory_space<vmem>>, vector<8x1xf32>
      %cst_10 = arith.constant 3.906250e-03 : f32
      %13 = vector.broadcast %cst_10 : f32 to vector<8x1xf32>
      %14 = arith.mulf %12, %13 : vector<8x1xf32>
      %c0_11 = arith.constant 0 : index
      %c0_12 = arith.constant 0 : index
      %15 = vector.load %arg3[%c0_11, %c0_12] : memref<8x1xf32, #tpu.memory_space<vmem>>, vector<8x1xf32>
      tpu.vector_store %arg3[%c0_11, %c0_12], %14 {strides = array<i32>} : memref<8x1xf32, #tpu.memory_space<vmem>>, vector<8x1xf32>,
    } else {
    }
    return
  }
  func.func @transform_0(%arg0: i32, %arg1: i32) -> (i32, i32) {
    %c0_i32 = arith.constant 0 : i32
    return %arg0, %arg1 : i32, i32
  }
  func.func @transform_1(%arg0: i32, %arg1: i32) -> (i32, i32) {
    %c0_i32 = arith.constant 0 : i32
    %c0_i32_0 = arith.constant 0 : i32
    return %arg0, %c0_i32 : i32, i32
  }
}

</mosaic_0001>

<bundles_post_ra>
// kernel: tpu_custom_call.1
= control target key start
LH: loop header
LB: loop body
LE: loop exit
PB: predicated region body
PF: predicated region fallthrough
CT: control target
= control target key end

     0   :  { %6 = vsyncpa [#allocation4], 0  ;;  %s70_s6 = smov [#allocation3]   ;;  %s88_s0 = inlined_call_operand.hbm [shape: f32[8,256], index: 0, kind: input, shape index: {}]   ;;  %s89_s1 = inlined_call_operand.vmem [shape: f32[8,1], index: 1, kind: output, shape index: {}]  }
   0x1   :  { %s13_s7 = sshll.u32 %s70_s6, 4  ;;  %s14_s7 = int_to_ptr.vmem [resolvable:$true] %s13_s7 }
   0x2   :  { %s56_s8 = scalar_lea.vmem %s14_s7, 256  ;;  %p61_p1 = scmp.lt.s32.totalorder %s14_s7, %s14_s7 }
   0x3   :  { %p57_p0 = scmp.ne.s32.totalorder %s14_s7, %s56_s8  ;;  %p62_p2 = scmp.lt.s32.totalorder %s56_s8, %s56_s8 }
   0x5   :  { %p63_p3 = por %p62_p2, %p61_p1 }
   0x7   :  { %p64_p4 = pnand %p63_p3, %p57_p0 }
   0x9   :  { %67 = shalt.err (!%p64_p4)
}
   0xa   :  { %16 = dma.hbm_to_vmem [thread:$0]  %s88_s0, 256, %s14_s7, [#allocation4]  }
   0xb   :  { %68 = dma.done.wait [#allocation4], 256  }
   0xc   :  { %69 = vsyncadd [#allocation4], 4294967040  ;;  %vm24_vm0 = vcmask 7168   ;;  %v71_v0 = vmov 0.0   ;;  %v26_v1 = vld [vmem:[#allocation3] sm:$0xff]  ;;  %v27_v2 = vld [vmem:[#allocation3 + $0x8] sm:$0xff] }
   0xd   :  { %25 = vst.msk [vmem:[#allocation2] sm:$0xff] %vm24_vm0, %v71_v0  ;;  %v29_v3 = vadd.f32 %v27_v2, %v26_v1 }
   0xf   :  { %30 = vadd.xlane.f32.xlu0 %v29_v3 }
  0x14   :  { %v28_v4 = vld [vmem:[#allocation2] sm:$0xff] }
  0x98   :  { %v31_v5 = vpop.xlane.xlu0 %30 }
  0x99   :  { %v32_v6 = vadd.f32 %v31_v5, %v28_v4 }
  0x9b   :  { %34 = vst.msk [vmem:[#allocation2] sm:$0xff] %vm24_vm0, %v32_v6 }
  0xa2   :  { %v38_v7 = vld [vmem:[#allocation2] sm:$0xff] }
  0xa3   :  { %v39_v8 = vmul.f32 0.00390625, %v38_v7 }
  0xa5   :  { %40 = vst.msk [vmem:[%s89_s1] sm:$0xff] %vm24_vm0, %v39_v8 }
  0xa6   :  { %45 = vsyncpa [#allocation4], 1 }

</bundles_post_ra>
